<compile_context>
chip_gen: v6e
topology: v6e:2x2x1
jax: 0.10.0
libtpu: 0.0.40
codegen_flags: <defaults>
</compile_context>

<pallas_src>
import functools
import math

import jax
import jax.numpy as jnp
import numpy as np
from jax.experimental import pallas as pl
from jax.experimental.pallas import tpu as pltpu


def _round_up(x: int, m: int) -> int:
    return ((x + m - 1) // m) * m


def _rff_kernel(t_ref, w_ref, phase_ref, o_ref, *, k: int):
    """One row-tile of the (row-packed) RFF embedding.

    t_ref:     [tile_r, k]    k original timestamps per packed output row
    w_ref:     [k, k*E]       row g holds 2*pi*[b | b] on lanes [g*E, (g+1)*E), 0 elsewhere
    phase_ref: [1, k*E]       0 on cos lanes, -pi/2 on sin lanes   (sin x = cos(x - pi/2))
    o_ref:     [tile_r, k*E]  packed embedding block (single lane-dense store)
    """
    # For each output lane exactly one of the k terms is non-zero, so this is the
    # exact f32 outer product t * (2*pi*b), done as pure VPU broadcast multiplies
    # (no MXU, no cross-lane shuffles).  k is a small compile-time constant.
    acc = t_ref[:, 0:1] * w_ref[0:1, :]
    for g in range(1, k):
        acc = acc + t_ref[:, g:g + 1] * w_ref[g:g + 1, :]
    o_ref[...] = jnp.cos(acc + phase_ref[...]).astype(o_ref.dtype)


def _choose_tile_rows(rp: int, row_out_bytes: int, row_in_bytes: int,
                      target_block_bytes: int, vmem_block_budget: int = 20 << 20) -> int:
    """Row-tile selection: ~target bytes of output per block, multiple of 8
    sublanes, double-buffered blocks well inside v7x's 64 MiB VMEM, and >=2
    grid programs (when the row count allows) so both v7x TensorCores work."""
    if rp <= 8:
        return rp                                            # single tiny block == full extent
    t = max(512, target_block_bytes // max(row_out_bytes, 1))
    t = min(t, vmem_block_budget // max(2 * (row_out_bytes + row_in_bytes), 1))
    t = min(t, 8192)
    t = max(8, (t // 8) * 8)                                  # multiple of 8 sublanes
    t = min(t, (rp // 8) * 8)                                 # never exceed the row count
    if -(-rp // t) < 2 and rp >= 16:                          # give each v7x core a block
        t = min((rp // 8) * 8, _round_up(-(-rp // 2), 8))
    return max(8, t)


def rff_time_embedding(timestamps, b, *,
                       out_dtype=jnp.float32,
                       target_block_bytes=2 << 20,
                       max_pack=16):
    """RFF time embedding.

    Args:
        timestamps: [B, L] or [B, L, 1] float array (values ideally in [0, 1]).
        b:          [half_dim] random frequencies (the torch buffer, squeezed).
        out_dtype:  output dtype (float32 matches torch; bfloat16 halves HBM writes).
    Returns:
        [B, L, 2*half_dim] embedding, matching the torch module.
    """
    timestamps = jnp.asarray(timestamps, jnp.float32)
    if timestamps.ndim == 3:
        timestamps = timestamps[..., 0]                       # (B, L, 1) -> (B, L)
    B, L = timestamps.shape

    b = jnp.asarray(b, jnp.float32).reshape(-1)
    half_dim = b.shape[0]
    E = 2 * half_dim
    R = B * L

    # ---- lane-dense row packing: stored rows of width k*E (multiple of 128) ----
    k = 128 // math.gcd(E, 128)                               # 1 when E % 128 == 0
    if k > max_pack or (R % k) != 0:
        # TODO(synk): fallback keeps sub-128-lane (masked) stores for tiny/odd E.
        k = 1
    Rp = R // k
    W = k * E

    # ---- frequency / phase rows (2*pi folded in once, wrapper-side) ----
    b_cat = jnp.concatenate([b, b]) * jnp.float32(2.0 * math.pi)            # [E]
    w = (jnp.eye(k, dtype=jnp.float32)[:, :, None] * b_cat[None, None, :])  # [k, k, E]
    w = w.reshape(k, W)                                                     # block-diagonal
    phase_cat = jnp.concatenate([
        jnp.zeros((half_dim,), jnp.float32),
        jnp.full((half_dim,), -0.5 * math.pi, jnp.float32),
    ])
    phase = jnp.tile(phase_cat, (k,)).reshape(1, W)                         # [1, k*E]

    t_in = timestamps.reshape(Rp, k)        # contiguous reshape, no copy

    # ---- adaptive row tile ----
    out_itemsize = jnp.dtype(out_dtype).itemsize
    row_out_bytes = W * out_itemsize
    row_in_bytes = k * 4
    tile_r = _choose_tile_rows(Rp, row_out_bytes, row_in_bytes, target_block_bytes)

    grid = (pl.cdiv(Rp, tile_r),)           # ragged last block handled by Pallas

    # VMEM: 2 double-buffered blocks per tiled tensor + tiny resident w/phase rows.
    vmem_est = 2 * tile_r * (row_out_bytes + row_in_bytes) + (k + 1) * W * 4
    vmem_limit = int(min(48 << 20, max(32 << 20, 2 * vmem_est)))

    cost = pl.CostEstimate(
        flops=int(3 * R * E),
        transcendentals=int(R * E),
        bytes_accessed=int(R * E * out_itemsize + R * 4 + (k + 1) * W * 4),
    )

    out = pl.pallas_call(
        functools.partial(_rff_kernel, k=k),
        out_shape=jax.ShapeDtypeStruct((Rp, W), out_dtype),
        grid=grid,
        in_specs=[
            pl.BlockSpec((tile_r, k), lambda i: (i, 0)),      # packed timestamps
            pl.BlockSpec((k, W), lambda i: (0, 0)),           # frequencies (VMEM-resident)
            pl.BlockSpec((1, W), lambda i: (0, 0)),           # phase row (VMEM-resident)
        ],
        out_specs=pl.BlockSpec((tile_r, W), lambda i: (i, 0)),
        compiler_params=pltpu.CompilerParams(
            dimension_semantics=("parallel",),                # shard rows over v7x's 2 TCs
            vmem_limit_bytes=vmem_limit,
        ),
        cost_estimate=cost,
    )(t_in, w, phase)

    # (Rp, k*E) and (B, L, E) share the same row-major linearization -> free reshape.
    return out.reshape(B, L, E)


def _reference(timestamps, b):
    """Pure-JAX reference matching the PyTorch forward."""
    timestamps = jnp.asarray(timestamps, jnp.float32)
    t = timestamps[..., None] if timestamps.ndim == 2 else timestamps
    b = jnp.asarray(b, jnp.float32).reshape(1, 1, -1)
    proj = 2.0 * np.pi * t * b                                # == 2*pi * t @ b.T
    return jnp.concatenate([jnp.cos(proj), jnp.sin(proj)], axis=-1)


if __name__ == "__main__":
    key = jax.random.PRNGKey(0)
    k_b1, k_t1, k_b2, k_t2 = jax.random.split(key, 4)
    sigma = 0.05

    # Case 1: module-sized example (embedding_dim=32 -> lane-dense packed path, k=4).
    B1, L1, M1 = 2, 8, 32
    b1 = jax.random.normal(k_b1, (M1 // 2,), dtype=jnp.float32) * sigma
    t1 = jax.random.uniform(k_t1, (B1, L1), dtype=jnp.float32)
    out1 = jax.block_until_ready(rff_time_embedding(t1, b1))
    ref1 = _reference(t1, b1)
    assert out1.shape == (B1, L1, M1), out1.shape
    assert jnp.allclose(out1, ref1, atol=1e-5, rtol=1e-5), float(jnp.max(jnp.abs(out1 - ref1)))

    # Case 2: lane-aligned E (k=1 path), (B, L, 1) input, ragged row count, >=2 grid blocks.
    B2, L2, M2 = 4, 101, 256
    b2 = jax.random.normal(k_b2, (M2 // 2,), dtype=jnp.float32) * sigma
    t2 = jax.random.uniform(k_t2, (B2, L2, 1), dtype=jnp.float32)
    out2 = jax.block_until_ready(rff_time_embedding(t2, b2))
    ref2 = _reference(t2, b2)
    assert out2.shape == (B2, L2, M2), out2.shape
    assert jnp.allclose(out2, ref2, atol=1e-5, rtol=1e-5), float(jnp.max(jnp.abs(out2 - ref2)))

    print("KERNEL_OK")
</pallas_src>

<mosaic_0001>
module attributes {stable_mosaic.version = 11 : i64} {
  func.func @_rff_kernel(%arg0: i32, %arg1: memref<4x4xf32, #tpu.memory_space<vmem>>, %arg2: memref<4x128xf32, #tpu.memory_space<vmem>>, %arg3: memref<1x128xf32, #tpu.memory_space<vmem>>, %arg4: memref<4x128xf32, #tpu.memory_space<vmem>>) attributes {dimension_semantics = [#tpu.dimension_semantics<parallel>], iteration_bounds = array<i64: 1>, scalar_prefetch = 0 : i64, scratch_operands = 0 : i64, tpu.core_type = #tpu.core_type<tc>, window_params = [{transform_indices = @transform_0, window_bounds = array<i64: 4, 4>}, {pipeline_mode = #tpu.pipeline_mode<synchronous>, transform_indices = @transform_1, window_bounds = array<i64: 4, 128>}, {pipeline_mode = #tpu.pipeline_mode<synchronous>, transform_indices = @transform_2, window_bounds = array<i64: 1, 128>}, {transform_indices = @transform_3, window_bounds = array<i64: 4, 128>}]} {
    %c0 = arith.constant 0 : index
    %c0_0 = arith.constant 0 : index
    %0 = vector.load %arg1[%c0, %c0_0] : memref<4x4xf32, #tpu.memory_space<vmem>>, vector<4x1xf32>
    %c0_1 = arith.constant 0 : index
    %c0_2 = arith.constant 0 : index
    %1 = vector.load %arg2[%c0_1, %c0_2] : memref<4x128xf32, #tpu.memory_space<vmem>>, vector<1x128xf32>
    %2 = vector.broadcast %0 : vector<4x1xf32> to vector<4x128xf32>
    %3 = vector.broadcast %1 : vector<1x128xf32> to vector<4x128xf32>
    %4 = arith.mulf %2, %3 : vector<4x128xf32>
    %c0_3 = arith.constant 0 : index
    %c1 = arith.constant 1 : index
    %5 = vector.load %arg1[%c0_3, %c1] : memref<4x4xf32, #tpu.memory_space<vmem>>, vector<4x1xf32>
    %c1_4 = arith.constant 1 : index
    %c0_5 = arith.constant 0 : index
    %6 = vector.load %arg2[%c1_4, %c0_5] : memref<4x128xf32, #tpu.memory_space<vmem>>, vector<1x128xf32>
    %7 = vector.broadcast %5 : vector<4x1xf32> to vector<4x128xf32>
    %8 = vector.broadcast %6 : vector<1x128xf32> to vector<4x128xf32>
    %9 = arith.mulf %7, %8 : vector<4x128xf32>
    %10 = arith.addf %4, %9 : vector<4x128xf32>
    %c0_6 = arith.constant 0 : index
    %c2 = arith.constant 2 : index
    %11 = vector.load %arg1[%c0_6, %c2] : memref<4x4xf32, #tpu.memory_space<vmem>>, vector<4x1xf32>
    %c2_7 = arith.constant 2 : index
    %c0_8 = arith.constant 0 : index
    %12 = vector.load %arg2[%c2_7, %c0_8] : memref<4x128xf32, #tpu.memory_space<vmem>>, vector<1x128xf32>
    %13 = vector.broadcast %11 : vector<4x1xf32> to vector<4x128xf32>
    %14 = vector.broadcast %12 : vector<1x128xf32> to vector<4x128xf32>
    %15 = arith.mulf %13, %14 : vector<4x128xf32>
    %16 = arith.addf %10, %15 : vector<4x128xf32>
    %c0_9 = arith.constant 0 : index
    %c3 = arith.constant 3 : index
    %17 = vector.load %arg1[%c0_9, %c3] : memref<4x4xf32, #tpu.memory_space<vmem>>, vector<4x1xf32>
    %c3_10 = arith.constant 3 : index
    %c0_11 = arith.constant 0 : index
    %18 = vector.load %arg2[%c3_10, %c0_11] : memref<4x128xf32, #tpu.memory_space<vmem>>, vector<1x128xf32>
    %19 = vector.broadcast %17 : vector<4x1xf32> to vector<4x128xf32>
    %20 = vector.broadcast %18 : vector<1x128xf32> to vector<4x128xf32>
    %21 = arith.mulf %19, %20 : vector<4x128xf32>
    %22 = arith.addf %16, %21 : vector<4x128xf32>
    %c0_12 = arith.constant 0 : index
    %c0_13 = arith.constant 0 : index
    %23 = vector.load %arg3[%c0_12, %c0_13] : memref<1x128xf32, #tpu.memory_space<vmem>>, vector<1x128xf32>
    %24 = vector.broadcast %23 : vector<1x128xf32> to vector<4x128xf32>
    %25 = arith.addf %22, %24 : vector<4x128xf32>
    %26 = math.cos %25 : vector<4x128xf32>
    %c0_14 = arith.constant 0 : index
    %c0_15 = arith.constant 0 : index
    %27 = vector.load %arg4[%c0_14, %c0_15] : memref<4x128xf32, #tpu.memory_space<vmem>>, vector<4x128xf32>
    tpu.vector_store %arg4[%c0_14, %c0_15], %26 {strides = array<i32>} : memref<4x128xf32, #tpu.memory_space<vmem>>, vector<4x128xf32>,
    return
  }
  func.func @transform_0(%arg0: i32) -> (i32, i32) {
    %c0_i32 = arith.constant 0 : i32
    %c0_i32_0 = arith.constant 0 : i32
    return %arg0, %c0_i32 : i32, i32
  }
  func.func @transform_1(%arg0: i32) -> (i32, i32) {
    %c0_i32 = arith.constant 0 : i32
    %c0_i32_0 = arith.constant 0 : i32
    %c0_i32_1 = arith.constant 0 : i32
    return %c0_i32, %c0_i32_0 : i32, i32
  }
  func.func @transform_2(%arg0: i32) -> (i32, i32) {
    %c0_i32 = arith.constant 0 : i32
    %c0_i32_0 = arith.constant 0 : i32
    %c0_i32_1 = arith.constant 0 : i32
    return %c0_i32, %c0_i32_0 : i32, i32
  }
  func.func @transform_3(%arg0: i32) -> (i32, i32) {
    %c0_i32 = arith.constant 0 : i32
    %c0_i32_0 = arith.constant 0 : i32
    return %arg0, %c0_i32 : i32, i32
  }
}

</mosaic_0001>

<bundles_post_ra>
// kernel: tpu_custom_call.1
= control target key start
LH: loop header
LB: loop body
LE: loop exit
PB: predicated region body
PF: predicated region fallthrough
CT: control target
= control target key end

     0   :  { %8 = vsyncpa [#allocation3], 0  ;;  %s379_s0 = inlined_call_operand.hbm [shape: f32[4,4], index: 0, kind: input, shape index: {}]   ;;  %s380_s1 = inlined_call_operand.hbm [shape: f32[4,128], index: 1, kind: input, shape index: {}]   ;;  %s381_s2 = inlined_call_operand.vmem [shape: f32[1,128], index: 2, kind: input, shape index: {}]   ;;  %s382_s3 = inlined_call_operand.hbm [shape: f32[4,128], index: 3, kind: output, shape index: {}]  }
   0x1   :  { %9 = vsyncpa [#allocation6], 0 }
   0x2   :  { %10 = vsyncpa [#allocation4], 0  ;;  %s313_s12 = smov [#allocation2]   ;;  %s314_s14 = smov [#allocation5]  }
   0x3   :  { %s17_s13 = sshll.u32 %s313_s12, 4  ;;  %s27_s15 = sshll.u32 %s314_s14, 4  ;;  %s18_s13 = int_to_ptr.vmem [resolvable:$true] %s17_s13  ;;  %s28_s15 = int_to_ptr.vmem [resolvable:$true] %s27_s15 }
   0x4   :  { %s255_s16 = scalar_lea.vmem %s18_s13, 64  ;;  %p260_p1 = scmp.lt.s32.totalorder %s18_s13, %s18_s13 }
   0x5   :  { %p256_p0 = scmp.ne.s32.totalorder %s18_s13, %s255_s16  ;;  %p261_p2 = scmp.lt.s32.totalorder %s255_s16, %s255_s16 }
   0x7   :  { %p262_p3 = por %p261_p2, %p260_p1 }
   0x9   :  { %p263_p4 = pnand %p262_p3, %p256_p0 }
   0xb   :  { %266 = shalt.err (!%p263_p4)
}
   0xc   :  { %20 = dma.hbm_to_vmem [thread:$0]  %s379_s0, 64, %s18_s13, [#allocation3]  }
   0xd   :  { %s275_s19 = scalar_lea.vmem %s28_s15, 64  ;;  %p280_p6 = scmp.lt.s32.totalorder %s28_s15, %s28_s15 }
   0xe   :  { %p276_p5 = scmp.ne.s32.totalorder %s28_s15, %s275_s19  ;;  %p281_p7 = scmp.lt.s32.totalorder %s275_s19, %s275_s19 }
  0x10   :  { %p282_p8 = por %p281_p7, %p280_p6 }
  0x12   :  { %p283_p9 = pnand %p282_p8, %p276_p5 }
  0x14   :  { %286 = shalt.err (!%p283_p9)
}
  0x15   :  { %30 = dma.hbm_to_vmem [thread:$0]  %s380_s1, 64, %s28_s15, [#allocation6]  }
  0x16   :  { %307 = dma.done.wait [#allocation3], 64  }
  0x17   :  { %308 = vsyncadd [#allocation3], 4294967232 }
  0x18   :  { %309 = dma.done.wait [#allocation6], 64  }
  0x19   :  { %310 = vsyncadd [#allocation6], 4294967232  ;;  %v315_v0 = vmov 0   ;;  %v316_v1 = vmov 2   ;;  %v39_v2 = vld [vmem:[#allocation2] sm:$0xf] }
  0x1a   :  { %238 = vset.pattern.permute.xlu0 %v315_v0  ;;  %240 = vset.pattern.permute.xlu1 %v316_v1  ;;  %v317_v3 = vmov 1   ;;  %v318_v4 = vmov 3   ;;  %v212_v7 = vld [vmem:[#allocation5] ss:$0 sm:$0xff]  ;;  %v213_v8 = vld [vmem:[#allocation5 + $0x1] ss:$0 sm:$0xff] }
  0x1b   :  { %43 = vperm.xlu0 %238, %v39_v2   ;;  %64 = vperm.xlu1 %240, %v39_v2   ;;  %v214_v9 = vld [vmem:[#allocation5 + $0x2] ss:$0 sm:$0xff]  ;;  %v215_v11 = vld [vmem:[#allocation5 + $0x3] ss:$0 sm:$0xff]  ;;  %v216_v19 = vld [vmem:[%s381_s2] ss:$0 sm:$0xff] }
  0x1c   :  { %v319_v32 = vmov 683565275   ;;  %v320_v34 = vmov 2475754826   ;;  %v321_v37 = vmov 2131351028  }
  0x1d   :  { %v322_v40 = vmov 2102212464   ;;  %v323_v43 = vmov 920167782   ;;  %v324_v46 = vmov 1326507024  }
  0x1e   :  { %s325_s2 = smov [#allocation7]  }
  0x1f   :  { %239 = vset.pattern.permute.xlu0 %v317_v3  ;;  %241 = vset.pattern.permute.xlu1 %v318_v4  ;;  %s202_s22 = sshll.u32 %s325_s2, 4  ;;  %s203_s22 = int_to_ptr.vmem [resolvable:$true] %s202_s22 }
  0x20   :  { %53 = vperm.xlu0 %239, %v39_v2   ;;  %75 = vperm.xlu1 %241, %v39_v2   ;;  %s287_s23 = scalar_lea.vmem %s203_s22, 64  ;;  %p292_p11 = scmp.lt.s32.totalorder %s203_s22, %s203_s22 }
  0x21   :  { %p288_p10 = scmp.ne.s32.totalorder %s203_s22, %s287_s23  ;;  %p293_p12 = scmp.lt.s32.totalorder %s287_s23, %s287_s23 }
  0x23   :  { %p294_p13 = por %p293_p12, %p292_p11 }
  0x24   :  { %242 = vset.pattern.permute.xlu0 %v318_v4 }
  0x25   :  { %p295_p0 = pnand %p294_p13, %p288_p10 }
  0x96   :  { %v44_v5 = vpop.permute.xlu0 %43  ;;  %v65_v6 = vpop.permute.xlu1 %64 }
  0x97   :  { %v50_v13 = vmul.f32 %v212_v7, %v44_v5  ;;  %v71_v15 = vmul.f32 %v214_v9, %v65_v6 }
  0x9b   :  { %v54_v10 = vpop.permute.xlu0 %53  ;;  %v76_v12 = vpop.permute.xlu1 %75 }
  0x9c   :  { %v60_v14 = vmul.f32 %v213_v8, %v54_v10  ;;  %v82_v17 = vmul.f32 %v215_v11, %v76_v12 }
  0x9e   :  { %v61_v16 = vadd.f32 %v60_v14, %v50_v13 }
  0xa0   :  { %v72_v18 = vadd.f32 %v71_v15, %v61_v16 }
  0xa2   :  { %v83_v20 = vadd.f32 %v82_v17, %v72_v18 }
  0xa4   :  { %v355_v21 = vadd.f32 %v216_v19, %v83_v20 }
  0xa6   :  { %v95_v22 = vand.u32 2139095040, %v355_v21  ;;  %v92_v26 = vand.u32 2147483647, %v355_v21  ;;  %vm94_vm7 = vcmp.lt.s32.totalorder %v355_v21, 0  ;;  %vm184_vm12 = vweird.f32 %v355_v21 }
  0xa8   :  { %v96_v23 = vshrl.u32 %v95_v22, 23  ;;  %v99_v30 = vand.u32 8388607, %v92_v26  ;;  %vm93_vm8 = vcmp.le.f32.partialorder %v92_v26, 0.7853982 }
  0xaa   :  { %v217_v24 = vadd.s32 4294967169, %v96_v23  ;;  %v100_v48 = vor.u32 8388608, %v99_v30 }
  0xac   :  { %v102_v25 = vadd.s32 1, %v217_v24  ;;  %v140_v62 = vshll.u32 %v100_v48, 8 }
  0xae   :  { %vm103_vm0 = vcmp.gt.s32.totalorder %v102_v25, 0 }
  0xaf   :  { %v104_v27 = vsel %vm103_vm0, %v102_v25, 0 }
  0xb0   :  { %v106_v28 = vand.u32 31, %v104_v27  ;;  %v105_v31 = vshrl.u32 %v104_v27, 5 }
  0xb2   :  { %v107_v29 = vsub.s32 32, %v106_v28  ;;  %v109_v33 = vshll.u32 %v319_v32, %v106_v28  ;;  %v112_v35 = vshll.u32 %v320_v34, %v106_v28  ;;  %v115_v39 = vshll.u32 %v321_v37, %v106_v28 }
  0xb3   :  { %v118_v42 = vshll.u32 %v322_v40, %v106_v28  ;;  %v121_v45 = vshll.u32 %v323_v43, %v106_v28  ;;  %vm124_vm1 = vcmp.lt.s32.totalorder %v105_v31, 1  ;;  %vm127_vm2 = vcmp.lt.s32.totalorder %v105_v31, 4 }
  0xb4   :  { %v110_v36 = vshrl.u32 %v320_v34, %v107_v29  ;;  %v113_v38 = vshrl.u32 %v321_v37, %v107_v29  ;;  %v116_v41 = vshrl.u32 %v322_v40, %v107_v29  ;;  %v119_v44 = vshrl.u32 %v323_v43, %v107_v29 }
  0xb5   :  { %v122_v47 = vshrl.u32 %v324_v46, %v107_v29  ;;  %v108_v57 = vshrl.u32 %v319_v32, %v107_v29  ;;  %vm126_vm3 = vcmp.lt.s32.totalorder %v105_v31, 3  ;;  %vm125_vm4 = vcmp.lt.s32.totalorder %v105_v31, 2 }
  0xb6   :  { %v111_v49 = vor.u32 %v110_v36, %v109_v33  ;;  %v114_v50 = vor.u32 %v113_v38, %v112_v35  ;;  %v117_v51 = vor.u32 %v116_v41, %v115_v39  ;;  %v120_v52 = vor.u32 %v119_v44, %v118_v42 }
  0xb7   :  { %v123_v53 = vor.u32 %v122_v47, %v121_v45 }
  0xb8   :  { %v129_v54 = vsel %vm127_vm2, %v117_v51, 2102212464  ;;  %v132_v55 = vsel %vm124_vm1, %v111_v49, %v114_v50  ;;  %v136_v56 = vsel %vm124_vm1, %v114_v50, %v117_v51  ;;  %v133_v58 = vsel %vm127_vm2, %v120_v52, 920167782 }
  0xb9   :  { %v137_v59 = vsel %vm127_vm2, %v123_v53, 1326507024  ;;  %v134_v60 = vsel %vm126_vm3, %v117_v51, %v133_v58  ;;  %v128_v63 = vsel %vm124_vm1, %v108_v57, %v111_v49  ;;  %v130_v0 = vsel %vm126_vm3, %v114_v50, %v129_v54 }
  0xba   :  { %v138_v61 = vsel %vm126_vm3, %v120_v52, %v137_v59  ;;  %v135_v1 = vsel %vm125_vm4, %v132_v55, %v134_v60  ;;  %v131_v7 = vsel %vm125_vm4, %v128_v63, %v130_v0 }
  0xbb   :  { %v139_v2 = vsel %vm125_vm4, %v136_v56, %v138_v61  ;;  %v364_v5 = vmul.u32.u64.low %v140_v62, %v135_v1  ;;  %v365_v6 = vmul.u32.u64.high %v140_v62, %v135_v1, %v364_v5  ;;  %v147_v9 = vmul.u32 %v140_v62, %v131_v7 }
  0xbc   :  { %v361_v3 = vmul.u32.u64.low %v140_v62, %v139_v2  ;;  %v362_v4 = vmul.u32.u64.high %v140_v62, %v139_v2, %v361_v3 }
  0xbd   :  { %v150_v8 = vadd.s32 1, %v365_v6 }
  0xbe   :  { %vm149_vm5 = vc.u32 %v362_v4, %v364_v5  ;;  %v148_v22 = vadd.s32 %v364_v5, %v362_v4 }
  0xbf   :  { %v151_v10 = vsel %vm149_vm5, %v150_v8, %v365_v6 }
  0xc0   :  { %v152_v11 = vadd.s32 %v151_v10, %v147_v9 }
  0xc2   :  { %v153_v12 = vadd.s32 536870912, %v152_v11 }
  0xc4   :  { %v154_v13 = vshrl.u32 %v153_v12, 30 }
  0xc6   :  { %v155_v14 = vshll.u32 %v154_v13, 30  ;;  %v178_v38 = vsub.s32 4, %v154_v13 }
  0xc8   :  { %v156_v15 = vsub.s32 %v152_v11, %v155_v14  ;;  %v179_v39 = vsel %vm94_vm7, %v178_v38, %v154_v13 }
  0xc9   :  { %v181_v40 = vsel %vm93_vm8, 0, %v179_v39 }
  0xca   :  { %v158_v16 = vsub.s32 0, %v156_v15  ;;  %v185_v41 = vand.u32 3, %v181_v40 }
  0xcc   :  { %v218_v17 = vmin.u32 %v158_v16, %v156_v15  ;;  %vm190_vm9 = vcmp.eq.s32.totalorder %v185_v41, 2  ;;  %vm187_vm10 = vcmp.eq.s32.totalorder %v185_v41, 0  ;;  %vm186_vm11 = vcmp.lt.s32.totalorder %v185_v41, 2 }
  0xce   :  { %v160_v18 = vclz %v218_v17 }
  0xd0   :  { %v219_v19 = vadd.s32 4294967294, %v160_v18 }
  0xd2   :  { %vm220_vm6 = vcmp.lt.s32.totalorder %v219_v19, 0 }
  0xd3   :  { %v163_v20 = vsel %vm220_vm6, 0, %v219_v19 }
  0xd4   :  { %v164_v23 = vsub.s32 32, %v163_v20  ;;  %v168_v24 = vsub.s32 4294967266, %v163_v20  ;;  %v165_v25 = vshll.u32 %v156_v15, %v163_v20 }
  0xd6   :  { %v166_v27 = vshrl.u32 %v148_v22, %v164_v23  ;;  %v169_v28 = vadd.s32 127, %v168_v24 }
  0xd8   :  { %v167_v29 = vor.u32 %v166_v27, %v165_v25  ;;  %v170_v30 = vshll.u32 %v169_v28, 23 }
  0xda   :  { %v171_v31 = vor.u32 4788187, %v170_v30  ;;  %v174_v33 = vcvt.s32.f32 %v167_v29 }
  0xdc   :  { %v172_v32 = vand.u32 2147483647, %v171_v31 }
  0xde   :  { %v175_v34 = vmul.f32 %v174_v33, %v172_v32 }
  0xe0   :  { %v176_v35 = vxor.u32 2147483648, %v175_v34 }
  0xe2   :  { %v177_v36 = vsel %vm94_vm7, %v176_v35, %v175_v34 }
  0xe3   :  { %v180_v37 = vsel %vm93_vm8, %v355_v21, %v177_v36 }
  0xe4   :  { %243 = vcosq.f32 %v180_v37 }
  0xe5   :  { %245 = vsinq.f32 %v180_v37 }
  0xf1   :  { %v244_v42 = vpop.eup %243 }
  0xf2   :  { %v246_v43 = vpop.eup %245  ;;  %v191_v44 = vxor.u32 2147483648, %v244_v42 }
  0xf3   :  { %v188_v45 = vxor.u32 2147483648, %v246_v43 }
  0xf4   :  { %v192_v46 = vsel %vm190_vm9, %v191_v44, %v246_v43 }
  0xf5   :  { %v189_v26 = vsel %vm187_vm10, %v244_v42, %v188_v45 }
  0xf6   :  { %v193_v47 = vsel %vm186_vm11, %v189_v26, %v192_v46 }
  0xf7   :  { %v194_v48 = vsel %vm184_vm12, nan, %v193_v47 }
  0xf8   :  { %195 = vst [vmem:[#allocation7] sm:$0xf] %v194_v48 }
  0xf9   :  { %298 = shalt.err (!%p295_p0)
}
  0xfa   :  { %205 = dma.vmem_to_hbm [thread:$0]  %s203_s22, 64, %s382_s3, [#allocation4]  }
  0xfb   :  { %311 = dma.done.wait [#allocation4], 64  }
  0xfc   :  { %312 = vsyncadd [#allocation4], 4294967232 }
  0xfd   :  { %209 = vsyncpa [#allocation3], 1 }
  0xfe   :  { %210 = vsyncpa [#allocation6], 1 }
  0xff   :  { %211 = vsyncpa [#allocation4], 1 }

</bundles_post_ra>
